<compile_context>
chip_gen: v7x
topology: tpu7x:2x2x1
jax: 0.10.0
libtpu: 0.0.40
codegen_flags: <defaults>
</compile_context>

<pallas_src>
import functools

import jax
import jax.numpy as jnp
from jax.experimental import pallas as pl
from jax.experimental.pallas import tpu as pltpu  # noqa: F401  (TPU backend)


# ----------------------------- Pallas kernel --------------------------------

def _rgcn_fused_kernel(adj_ref, x_ref,
                       w1_ref, b1_ref,
                       w2_ref, b2_ref,
                       w3_ref, b3_ref,
                       o_ref, *, num_relations):
    """Fused 3-layer RGCN forward + mean over nodes.

    adj_ref : (R, N, N)  row-normalized per-relation adjacency
    x_ref   : (N, Din)   node features
    w*_ref  : ((R+1)*D_in_l, D_out_l)  stacked [root; W_0; ...; W_{R-1}]
    b*_ref  : (1, D_out_l)
    o_ref   : (1, D_out_3) = mean over nodes of the last layer's output
    """
    adj = adj_ref[...]          # (R, N, N) resident in VMEM
    x = x_ref[...]              # (N, Din)

    def layer(h, w_ref, b_ref, relu):
        # R tiny aggregations (unrolled, R is a Python int), then ONE stacked
        # contraction covering the root transform + all relation transforms.
        parts = [h]
        for r in range(num_relations):
            parts.append(jnp.dot(adj[r], h, preferred_element_type=jnp.float32))
        hcat = jnp.concatenate(parts, axis=-1)            # (N, (R+1)*D)
        out = jnp.dot(hcat, w_ref[...],
                      preferred_element_type=jnp.float32) + b_ref[...]
        if relu:
            out = jnp.maximum(out, 0.0)
        return out

    u = layer(x, w1_ref, b1_ref, relu=True)
    u = layer(u, w2_ref, b2_ref, relu=True)
    u = layer(u, w3_ref, b3_ref, relu=False)

    inv_n = jnp.float32(1.0 / u.shape[0])
    o_ref[...] = jnp.sum(u, axis=0, keepdims=True) * inv_n   # mean over nodes


def rgcn_forward(x, adj, stacked_params):
    """Single-launch fused forward. stacked_params = 3x (w_stacked, bias2d)."""
    (w1, b1), (w2, b2), (w3, b3) = stacked_params
    hidden_dim = w3.shape[1]
    num_relations = adj.shape[0]
    kernel = functools.partial(_rgcn_fused_kernel, num_relations=num_relations)
    # No grid: single invocation, every operand is a full-array VMEM block
    # (total working set is a few tens of KiB — trivially fits VMEM on
    # v5e/v6e/v7x).  Only the (1, hidden) result is written back to HBM.
    return pl.pallas_call(
        kernel,
        out_shape=jax.ShapeDtypeStruct((1, hidden_dim), jnp.float32),
    )(adj, x, w1, b1, w2, b2, w3, b3)


# ------------------------------ JAX glue -------------------------------------

def build_relation_adjacency(edge_index, edge_type, num_nodes, num_relations):
    """Dense per-relation, mean-normalized adjacency (PyG RGCNConv aggr='mean')."""
    src = edge_index[0]
    dst = edge_index[1]
    adj = jnp.zeros((num_relations, num_nodes, num_nodes), jnp.float32)
    adj = adj.at[edge_type, dst, src].add(1.0)
    deg = jnp.sum(adj, axis=-1, keepdims=True)
    return adj / jnp.maximum(deg, 1.0)


def glorot(key, shape):
    fan_in, fan_out = shape[-2], shape[-1]
    limit = (6.0 / (fan_in + fan_out)) ** 0.5
    return jax.random.uniform(key, shape, jnp.float32, -limit, limit)


def init_rgcn_conv(key, in_dim, out_dim, num_relations):
    k_w, k_root = jax.random.split(key)
    w = glorot(k_w, (num_relations, in_dim, out_dim))
    root = glorot(k_root, (in_dim, out_dim))
    bias = jnp.zeros((out_dim,), jnp.float32)
    return (w, root, bias)


def stack_layer_params(w, root, bias):
    """Stack [root; W_0; ...; W_{R-1}] along the contraction axis.

    Matches the in-kernel concat order [h, adj_0 @ h, ..., adj_{R-1} @ h].
    """
    R, din, dout = w.shape
    w_stacked = jnp.concatenate([root[None], w], axis=0).reshape((R + 1) * din, dout)
    return w_stacked, bias.reshape(1, dout)


def model_forward(x, adj, params):
    stacked = tuple(stack_layer_params(w, root, bias) for (w, root, bias) in params)
    return rgcn_forward(x, adj, stacked)  # (1, hidden_dim)


# ------------------------------ main -----------------------------------------

if __name__ == "__main__":
    in_dim, hidden_dim, num_relations = 16, 32, 3
    num_nodes, num_edges = 8, 24

    key = jax.random.PRNGKey(0)
    kx, ksrc, kdst, ktype, kp1, kp2, kp3 = jax.random.split(key, 7)

    x = jax.random.normal(kx, (num_nodes, in_dim), jnp.float32)
    src = jax.random.randint(ksrc, (num_edges,), 0, num_nodes, jnp.int32)
    dst = jax.random.randint(kdst, (num_edges,), 0, num_nodes, jnp.int32)
    edge_index = jnp.stack([src, dst], axis=0)                      # (2, E)
    edge_type = jnp.sort(                                           # is_sorted=True
        jax.random.randint(ktype, (num_edges,), 0, num_relations, jnp.int32)
    )

    adj = build_relation_adjacency(edge_index, edge_type, num_nodes, num_relations)

    params = (
        init_rgcn_conv(kp1, in_dim, hidden_dim, num_relations),
        init_rgcn_conv(kp2, hidden_dim, hidden_dim, num_relations),
        init_rgcn_conv(kp3, hidden_dim, hidden_dim, num_relations),
    )

    out = model_forward(x, adj, params)
    out = jax.block_until_ready(out)
    assert out.shape == (1, hidden_dim)
    print("KERNEL_OK")
</pallas_src>

<mosaic_0001>
module attributes {stable_mosaic.version = 11 : i64} {
  func.func @_rgcn_fused_kernel(%arg0: memref<3x8x8xf32, #tpu.memory_space<vmem>>, %arg1: memref<8x16xf32, #tpu.memory_space<vmem>>, %arg2: memref<64x32xf32, #tpu.memory_space<vmem>>, %arg3: memref<1x32xf32, #tpu.memory_space<vmem>>, %arg4: memref<128x32xf32, #tpu.memory_space<vmem>>, %arg5: memref<1x32xf32, #tpu.memory_space<vmem>>, %arg6: memref<128x32xf32, #tpu.memory_space<vmem>>, %arg7: memref<1x32xf32, #tpu.memory_space<vmem>>, %arg8: memref<1x32xf32, #tpu.memory_space<vmem>>) attributes {dimension_semantics = [], scalar_prefetch = 0 : i64, scratch_operands = 0 : i64, tpu.core_type = #tpu.core_type<tc>} {
    %c0 = arith.constant 0 : index
    %c0_0 = arith.constant 0 : index
    %c0_1 = arith.constant 0 : index
    %0 = vector.load %arg0[%c0, %c0_0, %c0_1] : memref<3x8x8xf32, #tpu.memory_space<vmem>>, vector<3x8x8xf32>
    %c0_2 = arith.constant 0 : index
    %c0_3 = arith.constant 0 : index
    %1 = vector.load %arg1[%c0_2, %c0_3] : memref<8x16xf32, #tpu.memory_space<vmem>>, vector<8x16xf32>
    %2 = vector.extract_strided_slice %0 {offsets = [0, 0, 0], sizes = [1, 8, 8], strides = [1, 1, 1]} : vector<3x8x8xf32> to vector<1x8x8xf32>
    %3 = vector.shape_cast %2 : vector<1x8x8xf32> to vector<8x8xf32>
    %cst = arith.constant dense<0.000000e+00> : vector<8x16xf32>
    %4 = tpu.matmul %3, %1, %cst {dimension_numbers = #tpu.dot_dimension_numbers<[1], [0], [0], [1], [0, 0, 1, 1], [], []>} : vector<8x8xf32>, vector<8x16xf32>, vector<8x16xf32> -> vector<8x16xf32>
    %5 = vector.extract_strided_slice %0 {offsets = [1, 0, 0], sizes = [1, 8, 8], strides = [1, 1, 1]} : vector<3x8x8xf32> to vector<1x8x8xf32>
    %6 = vector.shape_cast %5 : vector<1x8x8xf32> to vector<8x8xf32>
    %cst_4 = arith.constant dense<0.000000e+00> : vector<8x16xf32>
    %7 = tpu.matmul %6, %1, %cst_4 {dimension_numbers = #tpu.dot_dimension_numbers<[1], [0], [0], [1], [0, 0, 1, 1], [], []>} : vector<8x8xf32>, vector<8x16xf32>, vector<8x16xf32> -> vector<8x16xf32>
    %8 = vector.extract_strided_slice %0 {offsets = [2, 0, 0], sizes = [1, 8, 8], strides = [1, 1, 1]} : vector<3x8x8xf32> to vector<1x8x8xf32>
    %9 = vector.shape_cast %8 : vector<1x8x8xf32> to vector<8x8xf32>
    %cst_5 = arith.constant dense<0.000000e+00> : vector<8x16xf32>
    %10 = tpu.matmul %9, %1, %cst_5 {dimension_numbers = #tpu.dot_dimension_numbers<[1], [0], [0], [1], [0, 0, 1, 1], [], []>} : vector<8x8xf32>, vector<8x16xf32>, vector<8x16xf32> -> vector<8x16xf32>
    %11 = tpu.concatenate %1, %4, %7, %10 in 1 : vector<8x16xf32>, vector<8x16xf32>, vector<8x16xf32>, vector<8x16xf32> -> vector<8x64xf32>
    %c0_6 = arith.constant 0 : index
    %c0_7 = arith.constant 0 : index
    %12 = vector.load %arg2[%c0_6, %c0_7] : memref<64x32xf32, #tpu.memory_space<vmem>>, vector<64x32xf32>
    %cst_8 = arith.constant dense<0.000000e+00> : vector<8x32xf32>
    %13 = tpu.matmul %11, %12, %cst_8 {dimension_numbers = #tpu.dot_dimension_numbers<[1], [0], [0], [1], [0, 0, 1, 1], [], []>} : vector<8x64xf32>, vector<64x32xf32>, vector<8x32xf32> -> vector<8x32xf32>
    %c0_9 = arith.constant 0 : index
    %c0_10 = arith.constant 0 : index
    %14 = vector.load %arg3[%c0_9, %c0_10] : memref<1x32xf32, #tpu.memory_space<vmem>>, vector<1x32xf32>
    %15 = vector.broadcast %14 : vector<1x32xf32> to vector<8x32xf32>
    %16 = arith.addf %13, %15 : vector<8x32xf32>
    %cst_11 = arith.constant 0.000000e+00 : f32
    %17 = vector.broadcast %cst_11 : f32 to vector<8x32xf32>
    %18 = arith.maximumf %16, %17 : vector<8x32xf32>
    %19 = vector.extract_strided_slice %0 {offsets = [0, 0, 0], sizes = [1, 8, 8], strides = [1, 1, 1]} : vector<3x8x8xf32> to vector<1x8x8xf32>
    %20 = vector.shape_cast %19 : vector<1x8x8xf32> to vector<8x8xf32>
    %cst_12 = arith.constant dense<0.000000e+00> : vector<8x32xf32>
    %21 = tpu.matmul %20, %18, %cst_12 {dimension_numbers = #tpu.dot_dimension_numbers<[1], [0], [0], [1], [0, 0, 1, 1], [], []>} : vector<8x8xf32>, vector<8x32xf32>, vector<8x32xf32> -> vector<8x32xf32>
    %22 = vector.extract_strided_slice %0 {offsets = [1, 0, 0], sizes = [1, 8, 8], strides = [1, 1, 1]} : vector<3x8x8xf32> to vector<1x8x8xf32>
    %23 = vector.shape_cast %22 : vector<1x8x8xf32> to vector<8x8xf32>
    %cst_13 = arith.constant dense<0.000000e+00> : vector<8x32xf32>
    %24 = tpu.matmul %23, %18, %cst_13 {dimension_numbers = #tpu.dot_dimension_numbers<[1], [0], [0], [1], [0, 0, 1, 1], [], []>} : vector<8x8xf32>, vector<8x32xf32>, vector<8x32xf32> -> vector<8x32xf32>
    %25 = vector.extract_strided_slice %0 {offsets = [2, 0, 0], sizes = [1, 8, 8], strides = [1, 1, 1]} : vector<3x8x8xf32> to vector<1x8x8xf32>
    %26 = vector.shape_cast %25 : vector<1x8x8xf32> to vector<8x8xf32>
    %cst_14 = arith.constant dense<0.000000e+00> : vector<8x32xf32>
    %27 = tpu.matmul %26, %18, %cst_14 {dimension_numbers = #tpu.dot_dimension_numbers<[1], [0], [0], [1], [0, 0, 1, 1], [], []>} : vector<8x8xf32>, vector<8x32xf32>, vector<8x32xf32> -> vector<8x32xf32>
    %28 = tpu.concatenate %18, %21, %24, %27 in 1 : vector<8x32xf32>, vector<8x32xf32>, vector<8x32xf32>, vector<8x32xf32> -> vector<8x128xf32>
    %c0_15 = arith.constant 0 : index
    %c0_16 = arith.constant 0 : index
    %29 = vector.load %arg4[%c0_15, %c0_16] : memref<128x32xf32, #tpu.memory_space<vmem>>, vector<128x32xf32>
    %cst_17 = arith.constant dense<0.000000e+00> : vector<8x32xf32>
    %30 = tpu.matmul %28, %29, %cst_17 {dimension_numbers = #tpu.dot_dimension_numbers<[1], [0], [0], [1], [0, 0, 1, 1], [], []>} : vector<8x128xf32>, vector<128x32xf32>, vector<8x32xf32> -> vector<8x32xf32>
    %c0_18 = arith.constant 0 : index
    %c0_19 = arith.constant 0 : index
    %31 = vector.load %arg5[%c0_18, %c0_19] : memref<1x32xf32, #tpu.memory_space<vmem>>, vector<1x32xf32>
    %32 = vector.broadcast %31 : vector<1x32xf32> to vector<8x32xf32>
    %33 = arith.addf %30, %32 : vector<8x32xf32>
    %cst_20 = arith.constant 0.000000e+00 : f32
    %34 = vector.broadcast %cst_20 : f32 to vector<8x32xf32>
    %35 = arith.maximumf %33, %34 : vector<8x32xf32>
    %36 = vector.extract_strided_slice %0 {offsets = [0, 0, 0], sizes = [1, 8, 8], strides = [1, 1, 1]} : vector<3x8x8xf32> to vector<1x8x8xf32>
    %37 = vector.shape_cast %36 : vector<1x8x8xf32> to vector<8x8xf32>
    %cst_21 = arith.constant dense<0.000000e+00> : vector<8x32xf32>
    %38 = tpu.matmul %37, %35, %cst_21 {dimension_numbers = #tpu.dot_dimension_numbers<[1], [0], [0], [1], [0, 0, 1, 1], [], []>} : vector<8x8xf32>, vector<8x32xf32>, vector<8x32xf32> -> vector<8x32xf32>
    %39 = vector.extract_strided_slice %0 {offsets = [1, 0, 0], sizes = [1, 8, 8], strides = [1, 1, 1]} : vector<3x8x8xf32> to vector<1x8x8xf32>
    %40 = vector.shape_cast %39 : vector<1x8x8xf32> to vector<8x8xf32>
    %cst_22 = arith.constant dense<0.000000e+00> : vector<8x32xf32>
    %41 = tpu.matmul %40, %35, %cst_22 {dimension_numbers = #tpu.dot_dimension_numbers<[1], [0], [0], [1], [0, 0, 1, 1], [], []>} : vector<8x8xf32>, vector<8x32xf32>, vector<8x32xf32> -> vector<8x32xf32>
    %42 = vector.extract_strided_slice %0 {offsets = [2, 0, 0], sizes = [1, 8, 8], strides = [1, 1, 1]} : vector<3x8x8xf32> to vector<1x8x8xf32>
    %43 = vector.shape_cast %42 : vector<1x8x8xf32> to vector<8x8xf32>
    %cst_23 = arith.constant dense<0.000000e+00> : vector<8x32xf32>
    %44 = tpu.matmul %43, %35, %cst_23 {dimension_numbers = #tpu.dot_dimension_numbers<[1], [0], [0], [1], [0, 0, 1, 1], [], []>} : vector<8x8xf32>, vector<8x32xf32>, vector<8x32xf32> -> vector<8x32xf32>
    %45 = tpu.concatenate %35, %38, %41, %44 in 1 : vector<8x32xf32>, vector<8x32xf32>, vector<8x32xf32>, vector<8x32xf32> -> vector<8x128xf32>
    %c0_24 = arith.constant 0 : index
    %c0_25 = arith.constant 0 : index
    %46 = vector.load %arg6[%c0_24, %c0_25] : memref<128x32xf32, #tpu.memory_space<vmem>>, vector<128x32xf32>
    %cst_26 = arith.constant dense<0.000000e+00> : vector<8x32xf32>
    %47 = tpu.matmul %45, %46, %cst_26 {dimension_numbers = #tpu.dot_dimension_numbers<[1], [0], [0], [1], [0, 0, 1, 1], [], []>} : vector<8x128xf32>, vector<128x32xf32>, vector<8x32xf32> -> vector<8x32xf32>
    %c0_27 = arith.constant 0 : index
    %c0_28 = arith.constant 0 : index
    %48 = vector.load %arg7[%c0_27, %c0_28] : memref<1x32xf32, #tpu.memory_space<vmem>>, vector<1x32xf32>
    %49 = vector.broadcast %48 : vector<1x32xf32> to vector<8x32xf32>
    %50 = arith.addf %47, %49 : vector<8x32xf32>
    %cst_29 = arith.constant dense<0.000000e+00> : vector<32xf32>
    %51 = vector.multi_reduction <add>, %50, %cst_29 [0] : vector<8x32xf32> to vector<32xf32>
    %52 = vector.shape_cast %51 : vector<32xf32> to vector<1x32xf32>
    %cst_30 = arith.constant 1.250000e-01 : f32
    %53 = vector.broadcast %cst_30 : f32 to vector<1x32xf32>
    %54 = arith.mulf %52, %53 : vector<1x32xf32>
    %c0_31 = arith.constant 0 : index
    %c0_32 = arith.constant 0 : index
    %55 = vector.load %arg8[%c0_31, %c0_32] : memref<1x32xf32, #tpu.memory_space<vmem>>, vector<1x32xf32>
    tpu.vector_store %arg8[%c0_31, %c0_32], %54 {strides = array<i32>} : memref<1x32xf32, #tpu.memory_space<vmem>>, vector<1x32xf32>,
    return
  }
}

</mosaic_0001>

<bundles_post_ra>
// kernel: tpu_custom_call.1
= control target key start
LH: loop header
LB: loop body
LE: loop exit
PB: predicated region body
PF: predicated region fallthrough
CT: control target
= control target key end

     0   :  { %vm34_vm0 = vcmask 64512   ;;  %v1325_v2 = vmov 0.0   ;;  %vm1326_vm1 = vmmov 0   ;;  %s1631_s0 = inlined_call_operand.vmem [shape: f32[3,8,8], index: 0, kind: input, shape index: {}]   ;;  %s1632_s1 = inlined_call_operand.vmem [shape: f32[8,16], index: 1, kind: input, shape index: {}]   ;;  %s1633_s2 = inlined_call_operand.vmem [shape: f32[64,32], index: 2, kind: input, shape index: {}]   ;;  %s1634_s3 = inlined_call_operand.vmem [shape: f32[1,32], index: 3, kind: input, shape index: {}]   ;;  %s1635_s4 = inlined_call_operand.vmem [shape: f32[128,32], index: 4, kind: input, shape index: {}]   ;;  %s1636_s5 = inlined_call_operand.vmem [shape: f32[1,32], index: 5, kind: input, shape index: {}]   ;;  %s1637_s6 = inlined_call_operand.vmem [shape: f32[128,32], index: 6, kind: input, shape index: {}]   ;;  %s1638_s7 = inlined_call_operand.vmem [shape: f32[1,32], index: 7, kind: input, shape index: {}]   ;;  %s1639_s8 = inlined_call_operand.hbm [shape: f32[1,32], index: 8, kind: output, shape index: {}]  }
   0x1   :  { %v33_v0 = vld [vmem:[%s1632_s1] sm:$0xff]  ;;  %1098 = vmatprep.subr.mxu0 %v1325_v2  ;;  %1100 = vmatprep.mubr.msk.f32.mxu0 %vm1326_vm1, %v1325_v2 }
   0x2   :  { %v1385_v1 = vld [vmem:[%s1631_s0] sm:$0xff] }
   0x3   :  { %13 = vsyncpa [#allocation3], 0  ;;  %1099 = vmatpush3.msra.mxu0 %v33_v0  ;;  %1103 = vmatprep.subr.mxu1 %v1325_v2  ;;  %v1394_v3 = vld [vmem:[%s1631_s0 + $0x8] sm:$0xff]  ;;  %v1404_v4 = vld [vmem:[%s1631_s0 + $0x10] sm:$0xff]  ;;  %v1327_v8 = vmov 0.0|0.0   ;;  %s1328_s27 = smov 16  }
   0x4   :  { %1101 = vmatmul.mubr.msk.f32.vlgmr.msra.gmra.mrb[0].mxu0 %vm34_vm0, %v1385_v1  ;;  %1104 = vmatpush3.msra.mxu1 %v33_v0  ;;  %v272_v5 = vld [vmem:[%s1633_s2] sm:$0xff]  ;;  %v273_v6 = vld [vmem:[%s1633_s2 + $0x8] sm:$0xff]  ;;  %v274_v7 = vld [vmem:[%s1633_s2 + $0x10] sm:$0xff]  ;;  %s1329_s28 = smov 32   ;;  %s1330_s29 = smov 48   ;;  %vm266_vm2 = vcmask 130048  }
   0x5   :  { %1105 = vmatprep.mubr.msk.f32.mxu1 %vm1326_vm1, %v1325_v2  ;;  %1108 = vmatprep.subr.mxu0 %v1325_v2  ;;  %v1233_v9 = vpack.c.bf16 %v273_v6, %v272_v5  ;;  %v275_v10 = vld [vmem:[%s1633_s2 + $0x18] sm:$0xff]  ;;  %v276_v12 = vld [vmem:[%s1633_s2 + $0x20] sm:$0xff]  ;;  %v277_v13 = vld [vmem:[%s1633_s2 + $0x28] sm:$0xff]  ;;  %vm268_vm3 = vcmask 261120   ;;  %vm270_vm4 = vcmask 392192   ;;  %vm287_vm5 = vcmask 523264  }
   0x6   :  { %1106 = vmatmul.mubr.msk.f32.vlgmr.msra.gmra.mrb[0].mxu1 %vm34_vm0, %v1394_v3  ;;  %1109 = vmatpush3.msra.mxu0 %v33_v0  ;;  %v1236_v11 = vpack.c.bf16 %v275_v10, %v274_v7  ;;  %v1239_v14 = vpack.c.bf16 %v277_v13, %v276_v12  ;;  %v278_v15 = vld [vmem:[%s1633_s2 + $0x30] sm:$0xff]  ;;  %v279_v16 = vld [vmem:[%s1633_s2 + $0x38] sm:$0xff]  ;;  %v1027_v30 = vld [vmem:[%s1634_s3] ss:$0 sm:$0xff]  ;;  %s1331_s13 = smov 64   ;;  %s1332_s14 = smov 96  }
   0x7   :  { %1110 = vmatprep.mubr.msk.f32.mxu0 %vm1326_vm1, %v1325_v2  ;;  %1129 = vmatprep.mubr.msk.f32.mxu1 %vm1326_vm1, %v1325_v2  ;;  %v1242_v17 = vpack.c.bf16 %v279_v16, %v278_v15  ;;  %v588_v35 = vld [vmem:[%s1635_s4] sm:$0xff]  ;;  %v589_v36 = vld [vmem:[%s1635_s4 + $0x8] sm:$0xff]  ;;  %v590_v37 = vld [vmem:[%s1635_s4 + $0x10] sm:$0xff]  ;;  %vm586_vm6 = vcmask 785408   ;;  %vm1008_vm7 = vcmask 253952  }
   0x8   :  { %1111 = vmatmul.mubr.msk.f32.vlgmr.msra.gmra.mrb[2].mxu0 %vm34_vm0, %v1404_v4  ;;  %1132 = vmatprep.subr.mxu0 %v1325_v2  ;;  %v1245_v38 = vpack.c.bf16 %v589_v36, %v588_v35  ;;  %v591_v39 = vld [vmem:[%s1635_s4 + $0x18] sm:$0xff]  ;;  %v592_v41 = vld [vmem:[%s1635_s4 + $0x20] sm:$0xff]  ;;  %v593_v42 = vld [vmem:[%s1635_s4 + $0x28] sm:$0xff] }
   0x9   :  { %1134 = vmatprep.mubr.msk.f32.mxu0 %vm1326_vm1, %v1325_v2  ;;  %1232 = vmatprep.subr.bf16.mxu1 %v1327_v8  ;;  %v1248_v40 = vpack.c.bf16 %v591_v39, %v590_v37  ;;  %v1251_v43 = vpack.c.bf16 %v593_v42, %v592_v41  ;;  %v594_v44 = vld [vmem:[%s1635_s4 + $0x30] sm:$0xff]  ;;  %v595_v45 = vld [vmem:[%s1635_s4 + $0x38] sm:$0xff]  ;;  %v596_v47 = vld [vmem:[%s1635_s4 + $0x40] sm:$0xff] }
   0xa   :  { %1234 = vmatpush3.bf16.msra.mxu1 %v1233_v9  ;;  %v1254_v46 = vpack.c.bf16 %v595_v45, %v594_v44  ;;  %v597_v48 = vld [vmem:[%s1635_s4 + $0x48] sm:$0xff]  ;;  %v598_v50 = vld [vmem:[%s1635_s4 + $0x50] sm:$0xff]  ;;  %v599_v51 = vld [vmem:[%s1635_s4 + $0x58] sm:$0xff] }
   0xb   :  { %1235 = vmatprep.subr.bf16.mxu1 %v1327_v8  ;;  %v1257_v49 = vpack.c.bf16 %v597_v48, %v596_v47  ;;  %v1260_v52 = vpack.c.bf16 %v599_v51, %v598_v50  ;;  %v600_v53 = vld [vmem:[%s1635_s4 + $0x60] sm:$0xff]  ;;  %v601_v54 = vld [vmem:[%s1635_s4 + $0x68] sm:$0xff]  ;;  %v602_v56 = vld [vmem:[%s1635_s4 + $0x70] sm:$0xff] }
   0xc   :  { %v1263_v55 = vpack.c.bf16 %v601_v54, %v600_v53  ;;  %v603_v57 = vld [vmem:[%s1635_s4 + $0x78] sm:$0xff]  ;;  %v1032_v12 = vld [vmem:[%s1636_s5] ss:$0 sm:$0xff] }
   0xd   :  { %v1266_v58 = vpack.c.bf16 %v603_v57, %v602_v56  ;;  %v922_v35 = vld [vmem:[%s1637_s6 + $0x78] sm:$0xff]  ;;  %v1036_v48 = vld [vmem:[%s1638_s7] ss:$0 sm:$0xff] }
   0xe   :  { %1237 = vmatpush3.bf16.msra.mxu1 %v1236_v11 }
   0xf   :  { %1238 = vmatprep.subr.bf16.mxu1 %v1327_v8 }
  0x12   :  { %1240 = vmatpush3.bf16.msra.mxu1 %v1239_v14 }
  0x13   :  { %1241 = vmatprep.subr.bf16.mxu1 %v1327_v8 }
  0x16   :  { %1243 = vmatpush3.bf16.msra.mxu1 %v1242_v17  ;;  %v909_v17 = vld [vmem:[%s1637_s6 + $0x10] sm:$0xff] }
  0x17   :  { %1187 = vmatprep.subr.mxu1 %v1325_v2 }
  0xd7   :  { %v104_v18 = vpop.f32.mrb[0].mxu0 }
  0xd8   :  { %255 = vrot.lane.b32.xlu0 %v104_v18, %s1328_s27  ;;  %v1102_v19 = vpop.f32.mrb[1].mxu0 }
  0xd9   :  { %v177_v20 = vpop.f32.mrb[0].mxu1 }
  0xda   :  { %v1107_v21 = vpop.f32.mrb[1].mxu1 }
  0xdb   :  { %v250_v22 = vpop.f32.mrb[2].mxu0 }
  0xdc   :  { %259 = vrot.lane.b32.xlu0 %v177_v20, %s1329_s28  ;;  %v1112_v23 = vpop.f32.mrb[3].mxu0  ;;  %263 = vrot.lane.b32.xlu1 %v250_v22, %s1330_s29  ;;  %v912_v20 = vld [vmem:[%s1637_s6 + $0x28] sm:$0xff]  ;;  %v913_v22 = vld [vmem:[%s1637_s6 + $0x30] sm:$0xff] }
  0xdd   :  { %v914_v23 = vld [vmem:[%s1637_s6 + $0x38] sm:$0xff] }
 0x14a   :  { %v256_v24 = vpop.permute.xlu0 %255 }
 0x14b   :  { %v267_v25 = vsel %vm266_vm2, %v33_v0, %v256_v24  ;;  %v1278_v24 = vpack.c.bf16 %v914_v23, %v913_v22 }
 0x14e   :  { %v260_v26 = vpop.permute.xlu0 %259  ;;  %v264_v27 = vpop.permute.xlu1 %263 }
 0x14f   :  { %v269_v28 = vsel %vm268_vm3, %v267_v25, %v260_v26  ;;  %v915_v25 = vld [vmem:[%s1637_s6 + $0x40] sm:$0xff]  ;;  %v916_v26 = vld [vmem:[%s1637_s6 + $0x48] sm:$0xff] }
 0x150   :  { %v271_v29 = vsel %vm270_vm4, %v269_v28, %v264_v27  ;;  %v1281_v27 = vpack.c.bf16 %v916_v26, %v915_v25  ;;  %v917_v28 = vld [vmem:[%s1637_s6 + $0x50] sm:$0xff] }
 0x151   :  { %1130 = vmatmul.mubr.msk.f32.vlgmr.msra.gmra.mrb[2].mxu1 %vm287_vm5, %v271_v29  ;;  %v918_v29 = vld [vmem:[%s1637_s6 + $0x58] sm:$0xff] }
 0x152   :  { %1189 = vmatprep.mubr.msk.f32.mxu1 %vm1326_vm1, %v1325_v2 }
 0x224   :  { %v357_v31 = vpop.f32.mrb[2].mxu1 }
 0x225   :  { %v358_v32 = vadd.f32 %v1027_v30, %v357_v31  ;;  %v1131_v33 = vpop.f32.mrb[3].mxu1  ;;  %v1284_v30 = vpack.c.bf16 %v918_v29, %v917_v28  ;;  %v919_v31 = vld [vmem:[%s1637_s6 + $0x60] sm:$0xff] }
 0x227   :  { %v1454_v34 = vmax.f32 %v358_v32, 0.0  ;;  %v920_v32 = vld [vmem:[%s1637_s6 + $0x68] sm:$0xff] }
 0x228   :  { %v1287_v33 = vpack.c.bf16 %v920_v32, %v919_v31 }
 0x229   :  { %1133 = vmatpush3.msra.mxu0 %v1454_v34 }
 0x22a   :  { %1135 = vmatmul.mubr.msk.f32.vlgmr.msra.gmra.mrb[4].mxu0 %vm34_vm0, %v1385_v1  ;;  %1137 = vmatprep.subr.mxu0 %v1325_v2 }
 0x22b   :  { %1138 = vmatpush3.msra.mxu0 %v1454_v34  ;;  %1139 = vmatprep.mubr.msk.f32.mxu0 %vm1326_vm1, %v1325_v2 }
 0x22c   :  { %1142 = vmatprep.subr.mxu0 %v1325_v2 }
 0x22e   :  { %1140 = vmatmul.mubr.msk.f32.vlgmr.msra.gmra.mrb[6].mxu0 %vm34_vm0, %v1394_v3 }
 0x22f   :  { %1143 = vmatpush3.msra.mxu0 %v1454_v34  ;;  %1144 = vmatprep.mubr.msk.f32.mxu0 %vm1326_vm1, %v1325_v2 }
 0x230   :  { %1244 = vmatprep.subr.bf16.mxu0 %v1327_v8 }
 0x232   :  { %1145 = vmatmul.mubr.msk.f32.vlgmr.msra.gmra.mrb[8].mxu0 %vm34_vm0, %v1404_v4 }
 0x233   :  { %1179 = vmatprep.mubr.msk.f32.mxu0 %vm1326_vm1, %v1325_v2  ;;  %1246 = vmatpush3.bf16.msra.mxu0 %v1245_v38 }
 0x234   :  { %1247 = vmatprep.subr.bf16.mxu0 %v1327_v8 }
 0x237   :  { %1249 = vmatpush3.bf16.msra.mxu0 %v1248_v40 }
 0x238   :  { %1250 = vmatprep.subr.bf16.mxu0 %v1327_v8 }
 0x23b   :  { %1252 = vmatpush3.bf16.msra.mxu0 %v1251_v43 }
 0x23c   :  { %1253 = vmatprep.subr.bf16.mxu0 %v1327_v8 }
 0x23f   :  { %1255 = vmatpush3.bf16.msra.mxu0 %v1254_v46 }
 0x240   :  { %1256 = vmatprep.subr.bf16.mxu0 %v1327_v8 }
 0x243   :  { %1258 = vmatpush3.bf16.msra.mxu0 %v1257_v49 }
 0x244   :  { %1259 = vmatprep.subr.bf16.mxu0 %v1327_v8 }
 0x247   :  { %1261 = vmatpush3.bf16.msra.mxu0 %v1260_v52 }
 0x248   :  { %1262 = vmatprep.subr.bf16.mxu0 %v1327_v8 }
 0x24b   :  { %1264 = vmatpush3.bf16.msra.mxu0 %v1263_v55 }
 0x24c   :  { %1265 = vmatprep.subr.bf16.mxu0 %v1327_v8 }
 0x24f   :  { %1267 = vmatpush3.bf16.msra.mxu0 %v1266_v58 }
 0x250   :  { %1182 = vmatprep.subr.mxu0 %v1325_v2 }
 0x2fd   :  { %v428_v59 = vpop.f32.mrb[4].mxu0 }
 0x2fe   :  { %573 = vrot.lane.b32.xlu1 %v428_v59, %s1329_s28  ;;  %v1136_v60 = vpop.f32.mrb[5].mxu0 }
 0x301   :  { %v498_v61 = vpop.f32.mrb[6].mxu0 }
 0x302   :  { %577 = vrot.lane.b32.xlu0 %v498_v61, %s1331_s13  ;;  %v1141_v62 = vpop.f32.mrb[7].mxu0 }
 0x305   :  { %v568_v63 = vpop.f32.mrb[8].mxu0 }
 0x306   :  { %581 = vrot.lane.b32.xlu1 %v568_v63, %s1332_s14  ;;  %v1146_v0 = vpop.f32.mrb[9].mxu0 }
 0x370   :  { %v574_v5 = vpop.permute.xlu1 %573 }
 0x371   :  { %v584_v7 = vsel %vm268_vm3, %v1454_v34, %v574_v5  ;;  %v921_v34 = vld [vmem:[%s1637_s6 + $0x70] sm:$0xff] }
 0x372   :  { %v1290_v36 = vpack.c.bf16 %v922_v35, %v921_v34 }
 0x374   :  { %v578_v6 = vpop.permute.xlu0 %577 }
 0x375   :  { %v585_v9 = vsel %vm287_vm5, %v584_v7, %v578_v6 }
 0x378   :  { %v582_v10 = vpop.permute.xlu1 %581 }
 0x379   :  { %v587_v11 = vsel %vm586_vm6, %v585_v9, %v582_v10 }
 0x37a   :  { %1180 = vmatmul.mubr.f32.vlgmr.msra.gmra.mrb[10].mxu0 %v587_v11 }
 0x37b   :  { %1184 = vmatprep.mubr.msk.f32.mxu0 %vm1326_vm1, %v1325_v2 }
 0x44d   :  { %v677_v13 = vpop.f32.mrb[10].mxu0 }
 0x44e   :  { %v678_v14 = vadd.f32 %v1032_v12, %v677_v13  ;;  %v1181_v15 = vpop.f32.mrb[11].mxu0 }
 0x450   :  { %v681_v16 = vmax.f32 %v678_v14, 0.0 }
 0x452   :  { %1183 = vmatpush3.msra.mxu0 %v681_v16  ;;  %1188 = vmatpush3.msra.mxu1 %v681_v16 }
 0x453   :  { %1185 = vmatmul.mubr.msk.f32.vlgmr.msra.gmra.mrb[12].mxu0 %vm34_vm0, %v1385_v1  ;;  %1190 = vmatmul.mubr.msk.f32.vlgmr.msra.gmra.mrb[4].mxu1 %vm34_vm0, %v1394_v3  ;;  %v907_v1 = vld [vmem:[%s1637_s6] sm:$0xff]  ;;  %v908_v3 = vld [vmem:[%s1637_s6 + $0x8] sm:$0xff] }
 0x454   :  { %1192 = vmatprep.subr.mxu1 %v1325_v2  ;;  %1194 = vmatprep.mubr.msk.f32.mxu1 %vm1326_vm1, %v1325_v2  ;;  %v1269_v18 = vpack.c.bf16 %v908_v3, %v907_v1 }
 0x455   :  { %1193 = vmatpush3.msra.mxu1 %v681_v16 }
 0x456   :  { %1268 = vmatprep.subr.bf16.mxu1 %v1327_v8 }
 0x457   :  { %1195 = vmatmul.mubr.msk.f32.vlgmr.msra.gmra.mrb[6].mxu1 %vm34_vm0, %v1404_v4  ;;  %v910_v4 = vld [vmem:[%s1637_s6 + $0x18] sm:$0xff] }
 0x458   :  { %1229 = vmatprep.mubr.msk.f32.mxu1 %vm1326_vm1, %v1325_v2  ;;  %1270 = vmatpush3.bf16.msra.mxu1 %v1269_v18  ;;  %v1272_v19 = vpack.c.bf16 %v910_v4, %v909_v17  ;;  %v911_v2 = vld [vmem:[%s1637_s6 + $0x20] sm:$0xff] }
 0x459   :  { %1271 = vmatprep.subr.bf16.mxu1 %v1327_v8  ;;  %v1275_v21 = vpack.c.bf16 %v912_v20, %v911_v2 }
 0x45c   :  { %1273 = vmatpush3.bf16.msra.mxu1 %v1272_v19 }
 0x45d   :  { %1274 = vmatprep.subr.bf16.mxu1 %v1327_v8 }
 0x460   :  { %1276 = vmatpush3.bf16.msra.mxu1 %v1275_v21 }
 0x461   :  { %1277 = vmatprep.subr.bf16.mxu1 %v1327_v8 }
 0x464   :  { %1279 = vmatpush3.bf16.msra.mxu1 %v1278_v24 }
 0x465   :  { %1280 = vmatprep.subr.bf16.mxu1 %v1327_v8 }
 0x468   :  { %1282 = vmatpush3.bf16.msra.mxu1 %v1281_v27 }
 0x469   :  { %1283 = vmatprep.subr.bf16.mxu1 %v1327_v8 }
 0x46c   :  { %1285 = vmatpush3.bf16.msra.mxu1 %v1284_v30 }
 0x46d   :  { %1286 = vmatprep.subr.bf16.mxu1 %v1327_v8 }
 0x470   :  { %1288 = vmatpush3.bf16.msra.mxu1 %v1287_v33 }
 0x471   :  { %1289 = vmatprep.subr.bf16.mxu1 %v1327_v8 }
 0x474   :  { %1291 = vmatpush3.bf16.msra.mxu1 %v1290_v36 }
 0x526   :  { %v748_v37 = vpop.f32.mrb[12].mxu0  ;;  %v818_v38 = vpop.f32.mrb[4].mxu1 }
 0x527   :  { %893 = vrot.lane.b32.xlu0 %v748_v37, %s1329_s28  ;;  %897 = vrot.lane.b32.xlu1 %v818_v38, %s1331_s13  ;;  %v1186_v39 = vpop.f32.mrb[13].mxu0  ;;  %v1191_v40 = vpop.f32.mrb[5].mxu1  ;;  %s1333_s13 = smov [#allocation2]  }
 0x52a   :  { %v888_v41 = vpop.f32.mrb[6].mxu1 }
 0x52b   :  { %901 = vrot.lane.b32.xlu0 %v888_v41, %s1332_s14  ;;  %v1196_v8 = vpop.f32.mrb[7].mxu1  ;;  %s1016_s14 = sshll.u32 %s1333_s13, 4  ;;  %s1017_s14 = int_to_ptr.vmem [resolvable:$true] %s1016_s14 }
 0x52c   :  { %s1301_s22 = scalar_lea.vmem %s1017_s14, 16  ;;  %s1305_s7 = scalar_lea.vmem %s1017_s14, 32 }
 0x52d   :  { %p1302_p0 = scmp.ne.s32.totalorder %s1017_s14, %s1301_s22  ;;  %p1306_p1 = scmp.lt.s32.totalorder %s1017_s14, %s1017_s14 }
 0x52e   :  { %p1307_p2 = scmp.lt.s32.totalorder %s1305_s7, %s1301_s22 }
 0x530   :  { %p1308_p3 = por %p1307_p2, %p1306_p1 }
 0x532   :  { %p1309_p4 = pnand %p1308_p3, %p1302_p0 }
 0x599   :  { %v894_v42 = vpop.permute.xlu0 %893  ;;  %v898_v44 = vpop.permute.xlu1 %897 }
 0x59a   :  { %v904_v43 = vsel %vm268_vm3, %v681_v16, %v894_v42 }
 0x59b   :  { %v905_v45 = vsel %vm287_vm5, %v904_v43, %v898_v44 }
 0x59d   :  { %v902_v46 = vpop.permute.xlu0 %901 }
 0x59e   :  { %v906_v47 = vsel %vm586_vm6, %v905_v45, %v902_v46 }
 0x59f   :  { %1230 = vmatmul.mubr.f32.vlgmr.msra.gmra.mrb[8].mxu1 %v906_v47 }
 0x672   :  { %v996_v49 = vpop.f32.mrb[8].mxu1 }
 0x673   :  { %v997_v50 = vadd.f32 %v1036_v48, %v996_v49  ;;  %v1231_v51 = vpop.f32.mrb[9].mxu1 }
 0x675   :  { %v1000_v52 = vsel %vm268_vm3, %v997_v50, 0.0 }
 0x676   :  { %v1001_v53 = vrot.slane %v1000_v52, 4 }
 0x678   :  { %v1002_v54 = vadd.f32 %v1001_v53, %v1000_v52 }
 0x67a   :  { %v1003_v55 = vrot.slane %v1002_v54, 2 }
 0x67c   :  { %v1004_v56 = vadd.f32 %v1003_v55, %v1002_v54 }
 0x67e   :  { %v1005_v57 = vrot.slane %v1004_v56, 1 }
 0x680   :  { %v1006_v58 = vadd.f32 %v1005_v57, %v1004_v56 }
 0x682   :  { %v1007_v59 = vmul.f32 0.125, %v1006_v58 }
 0x684   :  { %1009 = vst.msk [vmem:[#allocation2] sm:$0x1] %vm1008_vm7, %v1007_v59 }
 0x685   :  { %1312 = shalt.err (!%p1309_p4)
}
 0x686   :  { %s1313_s25 = scalar_lea.hbm %s1639_s8, 16 }
 0x687   :  { %p1314_p5 = scmp.ne.s32.totalorder %s1639_s8, %s1313_s25  ;;  %p1317_p6 = scmp.lt.u32.totalorder %s1313_s25, %s1639_s8 }
 0x689   :  { %p1319_p7 = pnand %p1317_p6, %p1314_p5 }
 0x68b   :  { %1322 = shalt.err (!%p1319_p7)
}
 0x68c   :  { %1019 = dma.vmem_to_hbm [thread:$0]  %s1017_s14, 16, %s1639_s8, [#allocation3]  }
 0x68d   :  { %1323 = dma.done.wait [#allocation3], 16  }
 0x68e   :  { %1324 = vsyncadd [#allocation3], 4294967280 }
 0x68f   :  { %1023 = vsyncpa [#allocation3], 1 }

</bundles_post_ra>
